<compile_context>
chip_gen: v7x
topology: tpu7x:2x2x1
jax: 0.10.0
libtpu: 0.0.40
codegen_flags: <defaults>
</compile_context>

<pallas_src>
import jax
import jax.numpy as jnp
from jax.experimental import pallas as pl
from jax.experimental.pallas import tpu as pltpu


# ---------------------------------------------------------------------------
# Kernel: one (TM, TN) output tile of  y = x @ W + b  per grid step.
#   x_ref: (TM, K)   w_ref: (K, TN)   b_ref: (1, TN) f32   o_ref: (TM, TN)
# ---------------------------------------------------------------------------
def _linear_bias_kernel(x_ref, w_ref, b_ref, o_ref):
    acc = jnp.dot(x_ref[...], w_ref[...], preferred_element_type=jnp.float32)
    o_ref[...] = (acc + b_ref[...]).astype(o_ref.dtype)


def _tiled_linear(x2d, w, b, out_dtype, tm=None, tn=None):
    """y = x2d @ w + b, tiled over (M, Dout) with the weight axis outermost."""
    M, K = x2d.shape
    Kw, N = w.shape
    assert K == Kw, (K, Kw)

    # Tile selection: full dim when small (always a legal block), otherwise
    # sublane/lane-aligned tiles (TM mult of 8/16, TN mult of 128).
    if tm is None:
        tm = M if M <= 256 else 256
    if tn is None:
        tn = N if N <= 512 else 512

    grid = (pl.cdiv(N, tn), pl.cdiv(M, tm))  # weight (N) axis changes slowest

    b2 = b.astype(jnp.float32).reshape(1, N)

    # Explicit VMEM budget: double-buffered x/W/bias/out tiles, plus headroom.
    xsz = jnp.dtype(x2d.dtype).itemsize
    wsz = jnp.dtype(w.dtype).itemsize
    osz = jnp.dtype(out_dtype).itemsize
    working = 2 * (tm * K * xsz + K * tn * wsz + tn * 4 + tm * tn * osz)
    vmem_limit = int(min(max(working * 3 // 2 + (1 << 20), 8 << 20), 64 << 20))

    return pl.pallas_call(
        _linear_bias_kernel,
        out_shape=jax.ShapeDtypeStruct((M, N), out_dtype),
        grid_spec=pltpu.PrefetchScalarGridSpec(
            num_scalar_prefetch=0,
            grid=grid,
            in_specs=[
                pl.BlockSpec((tm, K), lambda n, m: (m, 0)),   # activations
                pl.BlockSpec((K, tn), lambda n, m: (0, n)),   # weight tile (re-used over m)
                pl.BlockSpec((1, tn), lambda n, m: (0, n)),   # bias tile
            ],
            out_specs=pl.BlockSpec((tm, tn), lambda n, m: (m, n)),
        ),
        compiler_params=pltpu.CompilerParams(
            dimension_semantics=("parallel", "parallel"),
            vmem_limit_bytes=vmem_limit,
        ),
    )(x2d, w, b2)


def collage_context_embedder(encoder_hidden_states, params, *, tm=None, tn=None):
    """JAX/Pallas equivalent of CollageContextEmbedder.forward.

    encoder_hidden_states: (B, St, Dt) array, or tuple (x: (B, St, Dt),
      color: (B, Sc, Dc)).
    params: 'w_text' (Dt, Dout), 'b_text' (Dout,),
            'w_color' (Dc, Dout), 'b_color' (Dout,).
    For production Flux shapes, pass bf16 x / w_text (f32 accumulation is kept
    inside the kernel).
    """
    w_text = params["w_text"]
    b_text = params["b_text"]
    dout = w_text.shape[1]

    if isinstance(encoder_hidden_states, tuple):
        x, color = encoder_hidden_states
        B, St, Dt = x.shape
        _, Sc, Dc = color.shape

        # Heavy text projection: Pallas MXU kernel on the flattened (B*St, Dt) slab.
        y_text = _tiled_linear(
            x.reshape(B * St, Dt), w_text, b_text, x.dtype, tm, tn
        ).reshape(B, St, dout)

        # Degenerate K=3 color projection (zero-initialized Linear): plain XLA /
        # VPU path per the perf review — not worth an MXU pass or a misaligned
        # in-kernel concat store.
        w_color = params["w_color"]
        b_color = params["b_color"]
        y_color = (
            jnp.einsum(
                "bsc,cd->bsd",
                color.astype(jnp.float32),
                w_color.astype(jnp.float32),
            )
            + b_color.astype(jnp.float32)
        ).astype(x.dtype)

        # einops.pack((x, color), 'b * d')  <=>  concatenate along the seq axis.
        return jnp.concatenate([y_text, y_color], axis=1)
    else:
        x = encoder_hidden_states
        B, St, Dt = x.shape
        return _tiled_linear(
            x.reshape(B * St, Dt), w_text, b_text, x.dtype, tm, tn
        ).reshape(B, St, dout)


def _reference(encoder_hidden_states, params):
    w_text, b_text = params["w_text"], params["b_text"]
    w_color, b_color = params["w_color"], params["b_color"]
    if isinstance(encoder_hidden_states, tuple):
        x, color = encoder_hidden_states
        xt = x @ w_text + b_text
        ct = color @ w_color + b_color
        return jnp.concatenate([xt, ct], axis=1)
    return encoder_hidden_states @ w_text + b_text


if __name__ == "__main__":
    # Small shapes consistent with the module's forward.
    B, St, Dt = 2, 8, 32       # text tokens: batch, seq, text-encoder dim
    Sc, Dc = 4, 3              # color tokens: seq, color_dim=3
    Dout = 256                 # inner_dim (small stand-in for 3072)

    key = jax.random.PRNGKey(0)
    kx, kc, kw, kb = jax.random.split(key, 4)

    x = jax.random.normal(kx, (B, St, Dt), dtype=jnp.float32)
    color = jax.random.normal(kc, (B, Sc, Dc), dtype=jnp.float32)

    # text_embedder (wrapped "original_embedder"): Linear(Dt -> Dout), random init.
    # color_embedder: Linear(Dc -> Dout), zero-initialized exactly as in __init__.
    params = {
        "w_text": 0.02 * jax.random.normal(kw, (Dt, Dout), dtype=jnp.float32),
        "b_text": 0.01 * jax.random.normal(kb, (Dout,), dtype=jnp.float32),
        "w_color": jnp.zeros((Dc, Dout), dtype=jnp.float32),
        "b_color": jnp.zeros((Dout,), dtype=jnp.float32),
    }

    ref_tuple = _reference((x, color), params)
    ref_plain = _reference(x, params)

    # Tuple path (text + color, packed along the sequence axis), default tiles.
    out_tuple = jax.block_until_ready(collage_context_embedder((x, color), params))
    assert out_tuple.shape == (B, St + Sc, Dout)
    assert jnp.allclose(out_tuple, ref_tuple, atol=1e-5, rtol=1e-5)
    # Zero-initialized color embedder => color rows of the output are exactly zero.
    assert jnp.allclose(out_tuple[:, St:, :], 0.0)

    # Same path with explicit small tiles -> multi-tile (N_tiles, M_tiles) grid,
    # exercising the weight-outermost grid ordering and tiled stores.
    out_tiled = jax.block_until_ready(
        collage_context_embedder((x, color), params, tm=8, tn=128)
    )
    assert jnp.allclose(out_tiled, ref_tuple, atol=1e-5, rtol=1e-5)

    # Non-tuple path (just the wrapped text embedder).
    out_plain = jax.block_until_ready(collage_context_embedder(x, params))
    assert out_plain.shape == (B, St, Dout)
    assert jnp.allclose(out_plain, ref_plain, atol=1e-5, rtol=1e-5)

    print("KERNEL_OK")
</pallas_src>

<mosaic_0001>
module attributes {stable_mosaic.version = 11 : i64} {
  func.func @_linear_bias_kernel(%arg0: i32, %arg1: i32, %arg2: memref<16x32xf32, #tpu.memory_space<vmem>>, %arg3: memref<32x256xf32, #tpu.memory_space<vmem>>, %arg4: memref<1x256xf32, #tpu.memory_space<vmem>>, %arg5: memref<16x256xf32, #tpu.memory_space<vmem>>) attributes {dimension_semantics = [#tpu.dimension_semantics<parallel>, #tpu.dimension_semantics<parallel>], iteration_bounds = array<i64: 1, 1>, scalar_prefetch = 0 : i64, scratch_operands = 0 : i64, tpu.core_type = #tpu.core_type<tc>, window_params = [{transform_indices = @transform_0, window_bounds = array<i64: 16, 32>}, {transform_indices = @transform_1, window_bounds = array<i64: 32, 256>}, {transform_indices = @transform_2, window_bounds = array<i64: 1, 256>}, {transform_indices = @transform_3, window_bounds = array<i64: 16, 256>}]} {
    %c0 = arith.constant 0 : index
    %c0_0 = arith.constant 0 : index
    %0 = vector.load %arg2[%c0, %c0_0] : memref<16x32xf32, #tpu.memory_space<vmem>>, vector<16x32xf32>
    %c0_1 = arith.constant 0 : index
    %c0_2 = arith.constant 0 : index
    %1 = vector.load %arg3[%c0_1, %c0_2] : memref<32x256xf32, #tpu.memory_space<vmem>>, vector<32x256xf32>
    %cst = arith.constant dense<0.000000e+00> : vector<16x256xf32>
    %2 = tpu.matmul %0, %1, %cst {dimension_numbers = #tpu.dot_dimension_numbers<[1], [0], [0], [1], [0, 0, 1, 1], [], []>} : vector<16x32xf32>, vector<32x256xf32>, vector<16x256xf32> -> vector<16x256xf32>
    %c0_3 = arith.constant 0 : index
    %c0_4 = arith.constant 0 : index
    %3 = vector.load %arg4[%c0_3, %c0_4] : memref<1x256xf32, #tpu.memory_space<vmem>>, vector<1x256xf32>
    %4 = vector.broadcast %3 : vector<1x256xf32> to vector<16x256xf32>
    %5 = arith.addf %2, %4 : vector<16x256xf32>
    %c0_5 = arith.constant 0 : index
    %c0_6 = arith.constant 0 : index
    %6 = vector.load %arg5[%c0_5, %c0_6] : memref<16x256xf32, #tpu.memory_space<vmem>>, vector<16x256xf32>
    tpu.vector_store %arg5[%c0_5, %c0_6], %5 {strides = array<i32>} : memref<16x256xf32, #tpu.memory_space<vmem>>, vector<16x256xf32>,
    return
  }
  func.func @transform_0(%arg0: i32, %arg1: i32) -> (i32, i32) {
    %c0_i32 = arith.constant 0 : i32
    %c0_i32_0 = arith.constant 0 : i32
    return %arg1, %c0_i32 : i32, i32
  }
  func.func @transform_1(%arg0: i32, %arg1: i32) -> (i32, i32) {
    %c0_i32 = arith.constant 0 : i32
    %c0_i32_0 = arith.constant 0 : i32
    return %c0_i32, %arg0 : i32, i32
  }
  func.func @transform_2(%arg0: i32, %arg1: i32) -> (i32, i32) {
    %c0_i32 = arith.constant 0 : i32
    %c0_i32_0 = arith.constant 0 : i32
    return %c0_i32, %arg0 : i32, i32
  }
  func.func @transform_3(%arg0: i32, %arg1: i32) -> (i32, i32) {
    %c0_i32 = arith.constant 0 : i32
    return %arg1, %arg0 : i32, i32
  }
}

</mosaic_0001>

<bundles_post_ra>
// kernel: tpu_custom_call.1
= control target key start
LH: loop header
LB: loop body
LE: loop exit
PB: predicated region body
PF: predicated region fallthrough
CT: control target
= control target key end

     0   :  { %8 = vsyncpa [#allocation3], 0  ;;  %s338_s0 = inlined_call_operand.hbm [shape: f32[16,32], index: 0, kind: input, shape index: {}]   ;;  %s339_s1 = inlined_call_operand.hbm [shape: f32[32,256], index: 1, kind: input, shape index: {}]   ;;  %s340_s2 = inlined_call_operand.vmem [shape: f32[1,256], index: 2, kind: input, shape index: {}]   ;;  %s341_s3 = inlined_call_operand.hbm [shape: f32[16,256], index: 3, kind: output, shape index: {}]  }
   0x1   :  { %9 = vsyncpa [#allocation6], 0 }
   0x2   :  { %10 = vsyncpa [#allocation4], 0  ;;  %s265_s12 = smov [#allocation2]   ;;  %s193_s16 = scalar_lea.hbm %s338_s0, 256 }
   0x3   :  { %s16_s13 = sshll.u32 %s265_s12, 4  ;;  %p194_p0 = scmp.ne.s32.totalorder %s338_s0, %s193_s16  ;;  %s17_s13 = int_to_ptr.vmem [resolvable:$true] %s16_s13 }
   0x4   :  { %p197_p1 = scmp.lt.u32.totalorder %s193_s16, %s338_s0 }
   0x6   :  { %p199_p2 = pnand %p197_p1, %p194_p0 }
   0x8   :  { %202 = shalt.err (!%p199_p2)
}
   0x9   :  { %s203_s21 = scalar_lea.vmem %s17_s13, 256  ;;  %p208_p4 = scmp.lt.s32.totalorder %s17_s13, %s17_s13 }
   0xa   :  { %p204_p3 = scmp.ne.s32.totalorder %s17_s13, %s203_s21  ;;  %p209_p5 = scmp.lt.s32.totalorder %s203_s21, %s203_s21 }
   0xc   :  { %p210_p6 = por %p209_p5, %p208_p4 }
   0xe   :  { %p211_p7 = pnand %p210_p6, %p204_p3 }
  0x10   :  { %214 = shalt.err (!%p211_p7)
}
  0x11   :  { %s266_s22 = smov 128   ;;  %s267_s23 = smov 8  }
  0x12   :  { %22 = dma.hbm_to_vmem [thread:$0]  %s338_s0, 256, %s17_s13, [#allocation3], %s266_s22, %s266_s22, %s267_s23  }
  0x13   :  { %s268_s26 = smov [#allocation5]   ;;  %s215_s30 = scalar_lea.hbm %s339_s1, 1024 }
  0x14   :  { %s28_s27 = sshll.u32 %s268_s26, 4  ;;  %p216_p8 = scmp.ne.s32.totalorder %s339_s1, %s215_s30  ;;  %s29_s27 = int_to_ptr.vmem [resolvable:$true] %s28_s27 }
  0x15   :  { %p219_p9 = scmp.lt.u32.totalorder %s215_s30, %s339_s1 }
  0x17   :  { %p221_p10 = pnand %p219_p9, %p216_p8 }
  0x19   :  { %224 = shalt.err (!%p221_p10)
}
  0x1a   :  { %s225_s8 = scalar_lea.vmem %s29_s27, 1024  ;;  %p230_p12 = scmp.lt.s32.totalorder %s29_s27, %s29_s27 }
  0x1b   :  { %p226_p11 = scmp.ne.s32.totalorder %s29_s27, %s225_s8  ;;  %p231_p13 = scmp.lt.s32.totalorder %s225_s8, %s225_s8 }
  0x1d   :  { %p232_p0 = por %p231_p13, %p230_p12 }
  0x1f   :  { %p233_p1 = pnand %p232_p0, %p226_p11 }
  0x21   :  { %236 = shalt.err (!%p233_p1)
}
  0x22   :  { %s269_s0 = smov 256   ;;  %s270_s9 = smov 16  }
  0x23   :  { %34 = dma.hbm_to_vmem [thread:$0]  %s339_s1, 1024, %s29_s27, [#allocation6], %s269_s0, %s269_s0, %s270_s9  }
  0x24   :  { %259 = dma.done.wait [#allocation3], 256  }
  0x25   :  { %260 = vsyncadd [#allocation3], 4294967040 }
  0x26   :  { %261 = dma.done.wait [#allocation6], 1024  }
  0x27   :  { %262 = vsyncadd [#allocation6], 4294966272  ;;  %v271_v0 = vmov 0.0   ;;  %v46_v1 = vld [vmem:[#allocation5 + $0x8] sm:$0xff]  ;;  %v48_v2 = vld [vmem:[#allocation5 + $0x18] sm:$0xff]  ;;  %vm65_vm0 = vcmask 261120   ;;  %v55_v15 = vlaneseq }
  0x28   :  { %136 = vmatprep.mubr.f32.mxu0 %v271_v0  ;;  %142 = vmatprep.mubr.f32.mxu1 %v271_v0  ;;  %v45_v3 = vld [vmem:[#allocation5] sm:$0xff]  ;;  %v173_v4 = vpack.c.bf16 %v48_v2, %v46_v1  ;;  %v47_v5 = vld [vmem:[#allocation5 + $0x10] sm:$0xff]  ;;  %v50_v6 = vld [vmem:[#allocation5 + $0x28] sm:$0xff]  ;;  %s272_s13 = smov [#allocation7]  }
  0x29   :  { %v52_v7 = vld [vmem:[#allocation5 + $0x38] sm:$0xff]  ;;  %v175_v8 = vpack.c.bf16 %v47_v5, %v45_v3  ;;  %v49_v10 = vld [vmem:[#allocation5 + $0x20] sm:$0xff]  ;;  %v51_v11 = vld [vmem:[#allocation5 + $0x30] sm:$0xff]  ;;  %v56_v16 = vshrl.u32 %v55_v15, 7  ;;  %s158_s14 = sshll.u32 %s272_s13, 4  ;;  %s159_s14 = int_to_ptr.vmem [resolvable:$true] %s158_s14 }
  0x2a   :  { %v177_v9 = vpack.c.bf16 %v52_v7, %v50_v6  ;;  %174 = vmatprep.subr.bf16.mxu0 %v173_v4  ;;  %181 = vmatprep.subr.bf16.mxu1 %v173_v4  ;;  %v179_v12 = vpack.c.bf16 %v51_v11, %v49_v10  ;;  %v43_v13 = vld [vmem:[#allocation2] sm:$0xff]  ;;  %v44_v14 = vld [vmem:[#allocation2 + $0x8] sm:$0xff]  ;;  %s237_s15 = scalar_lea.vmem %s159_s14, 512  ;;  %p242_p3 = scmp.lt.s32.totalorder %s159_s14, %s159_s14 }
  0x2b   :  { %176 = vmatpush1.bf16.msra.mxu0 %v175_v8  ;;  %183 = vmatpush1.bf16.msra.mxu1 %v175_v8  ;;  %v57_v17 = vsub.s32 0, %v56_v16  ;;  %v53_v18 = vld [vmem:[%s340_s2] sm:$0x3]  ;;  %v61_v19 = vsub.s32 1, %v56_v16  ;;  %p238_p2 = scmp.ne.s32.totalorder %s159_s14, %s237_s15  ;;  %p243_p4 = scmp.lt.s32.totalorder %s237_s15, %s237_s15 }
  0x2c   :  { %178 = vmatprep.subr.bf16.mxu0 %v177_v9  ;;  %182 = vmatprep.subr.bf16.mxu1 %v177_v9 }
  0x2d   :  { %v58_v20 = vrot.slane %v53_v18, %v57_v17  ;;  %v62_v21 = vrot.slane %v53_v18, %v61_v19  ;;  %p244_p5 = por %p243_p4, %p242_p3 }
  0x2f   :  { %180 = vmatpush1.bf16.msra.mxu0 %v179_v12  ;;  %184 = vmatpush1.bf16.msra.mxu1 %v179_v12  ;;  %p245_p6 = pnand %p244_p5, %p238_p2 }
  0x32   :  { %171 = vmatmul.mubr.msk.f32.vlgmr.msra.gmra.mrb[0].mxu0 %vm65_vm0, %v43_v13  ;;  %172 = vmatmul.mubr.msk.f32.vlgmr.msra.gmra.mrb[0].mxu1 %vm65_vm0, %v44_v14 }
 0x105   :  { %v138_v22 = vpop.f32.mrb[0].mxu0  ;;  %v144_v23 = vpop.f32.mrb[0].mxu1 }
 0x106   :  { %v139_v24 = vadd.f32 %v138_v22, %v58_v20  ;;  %v145_v25 = vadd.f32 %v144_v23, %v58_v20  ;;  %v140_v26 = vpop.f32.mrb[1].mxu0  ;;  %v146_v27 = vpop.f32.mrb[1].mxu1 }
 0x107   :  { %v141_v28 = vadd.f32 %v140_v26, %v62_v21  ;;  %v147_v29 = vadd.f32 %v146_v27, %v62_v21 }
 0x108   :  { %149 = vst [vmem:[#allocation7] sm:$0xff] %v139_v24  ;;  %151 = vst [vmem:[#allocation7 + $0x10] sm:$0xff] %v145_v25 }
 0x109   :  { %150 = vst [vmem:[#allocation7 + $0x8] sm:$0xff] %v141_v28  ;;  %152 = vst [vmem:[#allocation7 + $0x18] sm:$0xff] %v147_v29 }
 0x10a   :  { %248 = shalt.err (!%p245_p6)
}
 0x10b   :  { %s249_s17 = scalar_lea.hbm %s341_s3, 512 }
 0x10c   :  { %p250_p7 = scmp.ne.s32.totalorder %s341_s3, %s249_s17  ;;  %p253_p8 = scmp.lt.u32.totalorder %s249_s17, %s341_s3 }
 0x10e   :  { %p255_p9 = pnand %p253_p8, %p250_p7 }
 0x110   :  { %258 = shalt.err (!%p255_p9)
}
 0x111   :  { %164 = dma.vmem_to_hbm [thread:$0]  %s159_s14, 512, %s341_s3, [#allocation4], %s269_s0, %s269_s0, %s270_s9  }
 0x112   :  { %263 = dma.done.wait [#allocation4], 512  }
 0x113   :  { %264 = vsyncadd [#allocation4], 4294966784 }
 0x114   :  { %168 = vsyncpa [#allocation3], 1 }
 0x115   :  { %169 = vsyncpa [#allocation6], 1 }
 0x116   :  { %170 = vsyncpa [#allocation4], 1 }

</bundles_post_ra>
